<compile_context>
chip_gen: v6e
topology: v6e:2x2x1
jax: 0.10.0
libtpu: 0.0.40
codegen_flags: <defaults>
</compile_context>

<pallas_src>
import functools

import jax
import jax.numpy as jnp
from jax.experimental import pallas as pl
from jax.experimental.pallas import tpu as pltpu


_LANE_W = 512                   # lane-dense slab width (multiple of 128)
_TARGET_BLOCK_BYTES = 2 << 20   # 2 MiB per input per block
_NUM_SPLITS = 2                 # leading "parallel" axis (2 TCs on v7x)


def _cdiv(a, b):
    return -(-a // b)


def _round_up(a, b):
    return _cdiv(a, b) * b


# ----------------------------- elementwise losses -----------------------------
def _elemwise(model_dist, loss_dist, Q):
    """Returns (elementwise fn, transcendentals/elem, flops/elem)."""
    if model_dist == "gaussian":
        return (lambda y, hx: (y - hx) ** 2), 0, 2
    if model_dist == "binomial":
        if loss_dist == "binomial":
            def fn(y, hx):
                # stable softplus: max(x,0) + log1p(exp(-|x|)); exp/log1p -> EUP
                sp = jnp.maximum(hx, 0.0) + jnp.log1p(jnp.exp(-jnp.abs(hx)))
                return -y * hx + sp
            return fn, 2, 6
        if loss_dist == "gaussian":
            def fn(y, hx):
                sig = 0.5 * (jnp.tanh(0.5 * hx) + 1.0)   # sigmoid via tanh (EUP)
                return (y - sig) ** 2
            return fn, 1, 5
    if model_dist == "poisson":
        if loss_dist == "poisson":
            return (lambda y, hx: -y * hx + jnp.exp(hx)), 1, 3
        if loss_dist == "gaussian":
            return (lambda y, hx: (y - Q * jnp.exp(hx)) ** 2), 1, 4
    raise NotImplementedError(
        f"branch ({model_dist},{loss_dist}) not implemented")


# --------------------------------- kernel -------------------------------------
def _dea_loss_kernel(y_ref, hx_ref, out_ref, acc_ref, *, elem_fn, block_rows,
                     sub_rows, lane_w, tiles_per_split, rows_full, rem_lane,
                     any_masked):
    i = pl.program_id(0)            # "parallel" split axis
    j = pl.program_id(1)            # "arbitrary" reduction axis (last)
    num_sub = block_rows // sub_rows

    @pl.when(j == 0)
    def _init():
        acc_ref[...] = jnp.zeros_like(acc_ref)

    row0 = (i * tiles_per_split + j) * block_rows   # nominal first row of tile

    def _accumulate(masked):
        def body(k, acc):
            r = pl.multiple_of(k * sub_rows, sub_rows)
            yv = y_ref[pl.ds(r, sub_rows), :].astype(jnp.float32)
            hv = hx_ref[pl.ds(r, sub_rows), :].astype(jnp.float32)
            loss = elem_fn(yv, hv)
            if masked:
                g_row = (row0 + r) + jax.lax.broadcasted_iota(
                    jnp.int32, (sub_rows, lane_w), 0)
                valid = g_row < rows_full
                if rem_lane:
                    col = jax.lax.broadcasted_iota(
                        jnp.int32, (sub_rows, lane_w), 1)
                    valid = valid | ((g_row == rows_full) & (col < rem_lane))
                # select: garbage/NaN from padded / out-of-bounds rows never leaks
                loss = jnp.where(valid, loss, 0.0)
            return acc + loss

        part = jax.lax.fori_loop(
            0, num_sub, body, jnp.zeros((sub_rows, lane_w), jnp.float32))
        acc_ref[...] += part        # one small VMEM update per grid step

    if not any_masked:
        _accumulate(masked=False)
    else:
        tile_is_clean = (row0 + block_rows) <= rows_full

        @pl.when(tile_is_clean)
        def _interior():
            _accumulate(masked=False)

        @pl.when(jnp.logical_not(tile_is_clean))
        def _boundary():
            _accumulate(masked=True)

    @pl.when(j == pl.num_programs(1) - 1)
    def _finalize():
        out_ref[0] = jnp.sum(acc_ref[...], keepdims=True)


# --------------------------------- wrapper -------------------------------------
def dea_loss_1d(y, Hx, *, model_dist, loss_dist=None, Q=1.0):
    """Pallas implementation of DEALoss1D.forward -> scalar loss (f32)."""
    assert y.shape == Hx.shape
    elem_fn, transc_pe, flops_pe = _elemwise(model_dist, loss_dist, float(Q))

    n = int(y.size)
    assert n > 0
    itemsize = jnp.dtype(y.dtype).itemsize
    row_align = max(8, 32 // itemsize)      # f32 -> 8, bf16 -> 16, int8/fp8 -> 32
    lane_w = _LANE_W

    rows = _cdiv(n, lane_w)                 # rows needed to hold n elements
    rows_full = n // lane_w                 # fully valid rows
    rem_lane = n % lane_w                   # valid lanes in the partial row

    target_rows = max(
        row_align,
        (_TARGET_BLOCK_BYTES // (itemsize * lane_w)) // row_align * row_align)

    if rows <= target_rows:
        # Small input: a single block holds the whole (row-padded) array.
        rows_padded = _round_up(rows, row_align)
        block_rows = rows_padded
    else:
        # Large input: no row padding — Pallas partial boundary blocks + the
        # pl.when-gated mask handle rows % block_rows.
        rows_padded = rows
        block_rows = target_rows

    sub_rows = row_align                    # vreg-scale chunk per inner-loop step
    tiles = _cdiv(rows_padded, block_rows)
    if tiles >= 2 * _NUM_SPLITS and tiles % _NUM_SPLITS == 0:
        num_splits = _NUM_SPLITS            # exact split -> no phantom tiles
    else:
        num_splits = 1
    tiles_per_split = tiles // num_splits

    n_padded = rows_padded * lane_w
    needs_pad = n_padded != n
    any_masked = (rem_lane != 0) or (tiles * block_rows > rows_full)

    def _prep(x):
        x = x.reshape(-1)
        if needs_pad:
            # Pad only to lane_w granularity for large ragged inputs (or up to a
            # row_align block for tiny inputs); divisible sizes reshape for free.
            x = jnp.pad(x, (0, n_padded - n))
        return x.reshape(rows_padded, lane_w)

    y2, hx2 = _prep(y), _prep(Hx)   # native dtype streams from HBM (no f32 copy)

    kernel = functools.partial(
        _dea_loss_kernel, elem_fn=elem_fn, block_rows=block_rows,
        sub_rows=sub_rows, lane_w=lane_w, tiles_per_split=tiles_per_split,
        rows_full=rows_full, rem_lane=rem_lane, any_masked=any_masked)

    cost = pl.CostEstimate(
        flops=int((flops_pe + 1) * n),
        transcendentals=int(transc_pe * n),
        bytes_accessed=int(2 * n * itemsize + num_splits * 4))

    partials = pl.pallas_call(
        kernel,
        out_shape=jax.ShapeDtypeStruct((num_splits, 1, 1), jnp.float32),
        grid_spec=pltpu.PrefetchScalarGridSpec(
            num_scalar_prefetch=0,
            grid=(num_splits, tiles_per_split),
            in_specs=[
                pl.BlockSpec((block_rows, lane_w),
                             lambda i, j: (i * tiles_per_split + j, 0)),
                pl.BlockSpec((block_rows, lane_w),
                             lambda i, j: (i * tiles_per_split + j, 0)),
            ],
            out_specs=pl.BlockSpec((1, 1, 1), lambda i, j: (i, 0, 0)),
            scratch_shapes=[pltpu.VMEM((sub_rows, lane_w), jnp.float32)],
        ),
        compiler_params=pltpu.CompilerParams(
            dimension_semantics=("parallel", "arbitrary")),
        cost_estimate=cost,
    )(y2, hx2)

    return jnp.sum(partials) * (1.0 / float(n))


# ------------------------------ pure-JAX reference ------------------------------
def _ref(y, Hx, model_dist, loss_dist, Q=1.0):
    fn, _, _ = _elemwise(model_dist, loss_dist, float(Q))
    return jnp.mean(fn(y.astype(jnp.float32), Hx.astype(jnp.float32)))


if __name__ == "__main__":
    key = jax.random.PRNGKey(0)
    ky, kh = jax.random.split(key)

    # Small "1D" signals consistent with the module: 16 batch rows of length 128.
    B, L = 16, 128
    y = jax.random.uniform(ky, (B, L), dtype=jnp.float32)        # e.g. in [0,1)
    Hx = jax.random.normal(kh, (B, L), dtype=jnp.float32) * 0.5  # logits / preds

    branches = [
        ("gaussian", None, 1.0),
        ("binomial", "binomial", 1.0),
        ("binomial", "gaussian", 1.0),
        ("poisson", "poisson", 1.0),
        ("poisson", "gaussian", 2.0),
    ]
    for model_dist, loss_dist, Q in branches:
        got = jax.block_until_ready(
            dea_loss_1d(y, Hx, model_dist=model_dist, loss_dist=loss_dist, Q=Q))
        want = _ref(y, Hx, model_dist, loss_dist, Q)
        assert jnp.allclose(got, want, rtol=1e-5, atol=1e-5), (
            model_dist, loss_dist, float(got), float(want))

    # bf16 pass-through path (no wrapper-side f32 cast / HBM copy).
    yb, hb = y.astype(jnp.bfloat16), Hx.astype(jnp.bfloat16)
    got = jax.block_until_ready(dea_loss_1d(yb, hb, model_dist="gaussian"))
    want = _ref(yb, hb, "gaussian", None)
    assert jnp.allclose(got, want, rtol=1e-3, atol=1e-3), (float(got), float(want))

    # Larger ragged shape: exercises the multi-tile chunked path, the partial
    # boundary block and the pl.when-gated mask (only the last tile pays for it).
    ky2, kh2 = jax.random.split(jax.random.PRNGKey(1))
    y2 = jax.random.uniform(ky2, (1200, 1000), dtype=jnp.float32)
    h2 = jax.random.normal(kh2, (1200, 1000), dtype=jnp.float32) * 0.5
    for model_dist, loss_dist, Q in [("gaussian", None, 1.0),
                                     ("binomial", "binomial", 1.0)]:
        got = jax.block_until_ready(
            dea_loss_1d(y2, h2, model_dist=model_dist, loss_dist=loss_dist, Q=Q))
        want = _ref(y2, h2, model_dist, loss_dist, Q)
        assert jnp.allclose(got, want, rtol=1e-4, atol=1e-5), (
            model_dist, loss_dist, float(got), float(want))

    print("KERNEL_OK")
</pallas_src>

<mosaic_0001>
module attributes {stable_mosaic.version = 11 : i64} {
  func.func @_dea_loss_kernel(%arg0: i32, %arg1: i32, %arg2: memref<8x512xf32, #tpu.memory_space<vmem>>, %arg3: memref<8x512xf32, #tpu.memory_space<vmem>>, %arg4: memref<1x1x1xf32, #tpu.memory_space<vmem>>, %arg5: memref<8x512xf32, #tpu.memory_space<vmem>>) attributes {dimension_semantics = [#tpu.dimension_semantics<parallel>, #tpu.dimension_semantics<arbitrary>], iteration_bounds = array<i64: 1, 1>, scalar_prefetch = 0 : i64, scratch_operands = 1 : i64, tpu.core_type = #tpu.core_type<tc>, window_params = [{transform_indices = @transform_0, window_bounds = array<i64: 8, 512>}, {transform_indices = @transform_1, window_bounds = array<i64: 8, 512>}, {transform_indices = @transform_2, window_bounds = array<i64: 1, 1, 1>}]} {
    %c0_i32 = arith.constant 0 : i32
    %0 = arith.cmpi eq, %arg1, %c0_i32 : i32
    %1 = arith.extui %0 : i1 to i32
    %c0_i32_0 = arith.constant 0 : i32
    %2 = arith.cmpi ne, %1, %c0_i32_0 : i32
    scf.if %2 {
      %cst = arith.constant 0.000000e+00 : f32
      %16 = vector.broadcast %cst : f32 to vector<8x512xf32>
      %c0 = arith.constant 0 : index
      %c0_6 = arith.constant 0 : index
      %17 = vector.load %arg5[%c0, %c0_6] : memref<8x512xf32, #tpu.memory_space<vmem>>, vector<8x512xf32>
      tpu.vector_store %arg5[%c0, %c0_6], %16 {strides = array<i32>} : memref<8x512xf32, #tpu.memory_space<vmem>>, vector<8x512xf32>,
    } else {
    }
    %c1_i32 = arith.constant 1 : i32
    %3 = arith.muli %arg0, %c1_i32 : i32
    %4 = arith.addi %3, %arg1 : i32
    %c8_i32 = arith.constant 8 : i32
    %5 = arith.muli %4, %c8_i32 : i32
    %c8_i32_1 = arith.constant 8 : i32
    %6 = arith.addi %5, %c8_i32_1 : i32
    %c4_i32 = arith.constant 4 : i32
    %7 = arith.cmpi sle, %6, %c4_i32 : i32
    %8 = arith.extui %7 : i1 to i32
    %c0_i32_2 = arith.constant 0 : i32
    %9 = arith.cmpi ne, %8, %c0_i32_2 : i32
    scf.if %9 {
      %cst = arith.constant 0.000000e+00 : f32
      %16 = vector.broadcast %cst : f32 to vector<8x512xf32>
      %c0_i32_6 = arith.constant 0 : i32
      %c8_i32_7 = arith.constant 8 : i32
      %17 = arith.muli %c0_i32_6, %c8_i32_7 : i32
      %18 = tpu.assume_multiple %17, 8 : i32
      %19 = arith.index_cast %18 : i32 to index
      %c0 = arith.constant 0 : index
      %20 = vector.load %arg2[%19, %c0] : memref<8x512xf32, #tpu.memory_space<vmem>>, vector<8x512xf32>
      %21 = arith.index_cast %18 : i32 to index
      %c0_8 = arith.constant 0 : index
      %22 = vector.load %arg3[%21, %c0_8] : memref<8x512xf32, #tpu.memory_space<vmem>>, vector<8x512xf32>
      %23 = arith.subf %20, %22 : vector<8x512xf32>
      %24 = arith.mulf %23, %23 : vector<8x512xf32>
      %25 = arith.addf %16, %24 : vector<8x512xf32>
      %c1_i32_9 = arith.constant 1 : i32
      %c0_10 = arith.constant 0 : index
      %c0_11 = arith.constant 0 : index
      %26 = vector.load %arg5[%c0_10, %c0_11] : memref<8x512xf32, #tpu.memory_space<vmem>>, vector<8x512xf32>
      %27 = arith.addf %26, %25 : vector<8x512xf32>
      %c0_12 = arith.constant 0 : index
      %c0_13 = arith.constant 0 : index
      %28 = vector.load %arg5[%c0_12, %c0_13] : memref<8x512xf32, #tpu.memory_space<vmem>>, vector<8x512xf32>
      tpu.vector_store %arg5[%c0_12, %c0_13], %27 {strides = array<i32>} : memref<8x512xf32, #tpu.memory_space<vmem>>, vector<8x512xf32>,
    } else {
    }
    %true = arith.constant true
    %10 = arith.xori %7, %true : i1
    %11 = arith.extui %10 : i1 to i32
    %c0_i32_3 = arith.constant 0 : i32
    %12 = arith.cmpi ne, %11, %c0_i32_3 : i32
    scf.if %12 {
      %cst = arith.constant 0.000000e+00 : f32
      %16 = vector.broadcast %cst : f32 to vector<8x512xf32>
      %c0_i32_6 = arith.constant 0 : i32
      %c8_i32_7 = arith.constant 8 : i32
      %17 = arith.muli %c0_i32_6, %c8_i32_7 : i32
      %18 = tpu.assume_multiple %17, 8 : i32
      %19 = arith.index_cast %18 : i32 to index
      %c0 = arith.constant 0 : index
      %20 = vector.load %arg2[%19, %c0] : memref<8x512xf32, #tpu.memory_space<vmem>>, vector<8x512xf32>
      %21 = arith.index_cast %18 : i32 to index
      %c0_8 = arith.constant 0 : index
      %22 = vector.load %arg3[%21, %c0_8] : memref<8x512xf32, #tpu.memory_space<vmem>>, vector<8x512xf32>
      %23 = arith.subf %20, %22 : vector<8x512xf32>
      %24 = arith.mulf %23, %23 : vector<8x512xf32>
      %25 = arith.addi %5, %18 : i32
      %26 = tpu.iota {dimensions = array<i32: 0>} : vector<8x512xi32>
      %27 = vector.broadcast %25 : i32 to vector<8x512xi32>
      %28 = arith.addi %27, %26 : vector<8x512xi32>
      %c4_i32_9 = arith.constant 4 : i32
      %29 = vector.broadcast %c4_i32_9 : i32 to vector<8x512xi32>
      %30 = arith.cmpi slt, %28, %29 : vector<8x512xi32>
      %cst_10 = arith.constant 0.000000e+00 : f32
      %31 = vector.broadcast %cst_10 : f32 to vector<8x512xf32>
      %32 = arith.select %30, %24, %31 : vector<8x512xi1>, vector<8x512xf32>
      %33 = arith.addf %16, %32 : vector<8x512xf32>
      %c1_i32_11 = arith.constant 1 : i32
      %c0_12 = arith.constant 0 : index
      %c0_13 = arith.constant 0 : index
      %34 = vector.load %arg5[%c0_12, %c0_13] : memref<8x512xf32, #tpu.memory_space<vmem>>, vector<8x512xf32>
      %35 = arith.addf %34, %33 : vector<8x512xf32>
      %c0_14 = arith.constant 0 : index
      %c0_15 = arith.constant 0 : index
      %36 = vector.load %arg5[%c0_14, %c0_15] : memref<8x512xf32, #tpu.memory_space<vmem>>, vector<8x512xf32>
      tpu.vector_store %arg5[%c0_14, %c0_15], %35 {strides = array<i32>} : memref<8x512xf32, #tpu.memory_space<vmem>>, vector<8x512xf32>,
    } else {
    }
    %c0_i32_4 = arith.constant 0 : i32
    %13 = arith.cmpi eq, %arg1, %c0_i32_4 : i32
    %14 = arith.extui %13 : i1 to i32
    %c0_i32_5 = arith.constant 0 : i32
    %15 = arith.cmpi ne, %14, %c0_i32_5 : i32
    scf.if %15 {
      %c0 = arith.constant 0 : index
      %c0_6 = arith.constant 0 : index
      %16 = vector.load %arg5[%c0, %c0_6] : memref<8x512xf32, #tpu.memory_space<vmem>>, vector<8x512xf32>
      %17 = vector.shape_cast %16 : vector<8x512xf32> to vector<1x8x512xf32>
      %cst = arith.constant dense<0.000000e+00> : vector<1xf32>
      %18 = vector.multi_reduction <add>, %17, %cst [1, 2] : vector<1x8x512xf32> to vector<1xf32>
      %19 = vector.shape_cast %18 : vector<1xf32> to vector<1x1x1xf32>
      %20 = vector.extract %19[0, 0, 0] : f32 from vector<1x1x1xf32>
      %21 = vector.broadcast %20 : f32 to vector<1x1xf32>
      %c0_7 = arith.constant 0 : index
      %c0_8 = arith.constant 0 : index
      %c0_9 = arith.constant 0 : index
      %22 = vector.load %arg4[%c0_7, %c0_8, %c0_9] : memref<1x1x1xf32, #tpu.memory_space<vmem>>, vector<1x1x1xf32>
      %23 = vector.shape_cast %22 : vector<1x1x1xf32> to vector<1x1xf32>
      %24 = vector.shape_cast %21 : vector<1x1xf32> to vector<1x1x1xf32>
      tpu.vector_store %arg4[%c0_7, %c0_8, %c0_9], %24 {strides = array<i32>} : memref<1x1x1xf32, #tpu.memory_space<vmem>>, vector<1x1x1xf32>,
    } else {
    }
    return
  }
  func.func @transform_0(%arg0: i32, %arg1: i32) -> (i32, i32) {
    %c1_i32 = arith.constant 1 : i32
    %0 = arith.muli %arg0, %c1_i32 : i32
    %1 = arith.addi %0, %arg1 : i32
    %c0_i32 = arith.constant 0 : i32
    %c0_i32_0 = arith.constant 0 : i32
    return %1, %c0_i32 : i32, i32
  }
  func.func @transform_1(%arg0: i32, %arg1: i32) -> (i32, i32) {
    %c1_i32 = arith.constant 1 : i32
    %0 = arith.muli %arg0, %c1_i32 : i32
    %1 = arith.addi %0, %arg1 : i32
    %c0_i32 = arith.constant 0 : i32
    %c0_i32_0 = arith.constant 0 : i32
    return %1, %c0_i32 : i32, i32
  }
  func.func @transform_2(%arg0: i32, %arg1: i32) -> (i32, i32, i32) {
    %c0_i32 = arith.constant 0 : i32
    %c0_i32_0 = arith.constant 0 : i32
    %c0_i32_1 = arith.constant 0 : i32
    return %arg0, %c0_i32, %c0_i32_0 : i32, i32, i32
  }
}

</mosaic_0001>

<bundles_post_ra>
// kernel: tpu_custom_call.1
= control target key start
LH: loop header
LB: loop body
LE: loop exit
PB: predicated region body
PF: predicated region fallthrough
CT: control target
= control target key end

     0   :  { %7 = vsyncpa [#allocation4], 0  ;;  %s285_s0 = inlined_call_operand.hbm [shape: f32[8,512], index: 0, kind: input, shape index: {}]   ;;  %s286_s1 = inlined_call_operand.hbm [shape: f32[8,512], index: 1, kind: input, shape index: {}]   ;;  %s287_s2 = inlined_call_operand.hbm [shape: f32[1,1,1], index: 2, kind: output, shape index: {}]  }
   0x1   :  { %8 = vsyncpa [#allocation7], 0 }
   0x2   :  { %9 = vsyncpa [#allocation5], 0  ;;  %s258_s9 = smov [#allocation3]   ;;  %s259_s11 = smov [#allocation6]  }
   0x3   :  { %s20_s10 = sshll.u32 %s258_s9, 4  ;;  %s34_s12 = sshll.u32 %s259_s11, 4  ;;  %s21_s10 = int_to_ptr.vmem [resolvable:$true] %s20_s10  ;;  %s35_s12 = int_to_ptr.vmem [resolvable:$true] %s34_s12 }
   0x4   :  { %s200_s13 = scalar_lea.vmem %s21_s10, 512  ;;  %p205_p1 = scmp.lt.s32.totalorder %s21_s10, %s21_s10 }
   0x5   :  { %p201_p0 = scmp.ne.s32.totalorder %s21_s10, %s200_s13  ;;  %p206_p2 = scmp.lt.s32.totalorder %s200_s13, %s200_s13 }
   0x7   :  { %p207_p3 = por %p206_p2, %p205_p1 }
   0x9   :  { %p208_p4 = pnand %p207_p3, %p201_p0 }
   0xb   :  { %211 = shalt.err (!%p208_p4)
}
   0xc   :  { %23 = dma.hbm_to_vmem [thread:$0]  %s285_s0, 512, %s21_s10, [#allocation4]  }
   0xd   :  { %s220_s16 = scalar_lea.vmem %s35_s12, 512  ;;  %p225_p6 = scmp.lt.s32.totalorder %s35_s12, %s35_s12 }
   0xe   :  { %p221_p5 = scmp.ne.s32.totalorder %s35_s12, %s220_s16  ;;  %p226_p7 = scmp.lt.s32.totalorder %s220_s16, %s220_s16 }
  0x10   :  { %p227_p8 = por %p226_p7, %p225_p6 }
  0x12   :  { %p228_p9 = pnand %p227_p8, %p221_p5 }
  0x14   :  { %231 = shalt.err (!%p228_p9)
}
  0x15   :  { %37 = dma.hbm_to_vmem [thread:$0]  %s286_s1, 512, %s35_s12, [#allocation7]  }
  0x16   :  { %252 = dma.done.wait [#allocation4], 512  }
  0x17   :  { %253 = vsyncadd [#allocation4], 4294966784 }
  0x18   :  { %254 = dma.done.wait [#allocation7], 512  }
  0x19   :  { %255 = vsyncadd [#allocation7], 4294966784  ;;  %v124_v0 = vlaneseq  ;;  %v105_v2 = vld [vmem:[#allocation3] sm:$0xff]  ;;  %v106_v3 = vld [vmem:[#allocation3 + $0x8] sm:$0xff]  ;;  %s260_s0 = smov [#allocation8]   ;;  %vm169_vm1 = vcmask 0  }
  0x1a   :  { %v107_v4 = vld [vmem:[#allocation3 + $0x10] sm:$0xff]  ;;  %v108_v5 = vld [vmem:[#allocation3 + $0x18] sm:$0xff]  ;;  %v111_v6 = vld [vmem:[#allocation6] sm:$0xff]  ;;  %s177_s1 = sshll.u32 %s260_s0, 4  ;;  %s178_s1 = int_to_ptr.vmem [resolvable:$true] %s177_s1 }
  0x1b   :  { %v125_v1 = vshrl.u32 %v124_v0, 7  ;;  %v112_v7 = vld [vmem:[#allocation6 + $0x8] sm:$0xff]  ;;  %v113_v8 = vld [vmem:[#allocation6 + $0x10] sm:$0xff]  ;;  %v114_v9 = vld [vmem:[#allocation6 + $0x18] sm:$0xff]  ;;  %v115_v10 = vsub.f32 %v105_v2, %v111_v6  ;;  %s232_s20 = scalar_lea.vmem %s178_s1, 16  ;;  %s236_s21 = scalar_lea.vmem %s178_s1, 32 }
  0x1c   :  { %v116_v11 = vsub.f32 %v106_v3, %v112_v7  ;;  %v117_v12 = vsub.f32 %v107_v4, %v113_v8  ;;  %v118_v13 = vsub.f32 %v108_v5, %v114_v9  ;;  %p233_p10 = scmp.ne.s32.totalorder %s178_s1, %s232_s20  ;;  %p237_p11 = scmp.lt.s32.totalorder %s178_s1, %s178_s1 }
  0x1d   :  { %vm128_vm0 = vcmp.lt.s32.totalorder %v125_v1, 4  ;;  %v119_v14 = vmul.f32 %v115_v10, %v115_v10  ;;  %p238_p12 = scmp.lt.s32.totalorder %s236_s21, %s232_s20 }
  0x1e   :  { %v120_v15 = vmul.f32 %v116_v11, %v116_v11  ;;  %v121_v16 = vmul.f32 %v117_v12, %v117_v12  ;;  %v122_v17 = vmul.f32 %v118_v13, %v118_v13 }
  0x1f   :  { %v129_v18 = vsel %vm128_vm0, %v119_v14, 0.0  ;;  %p239_p13 = por %p238_p12, %p237_p11 }
  0x20   :  { %v130_v19 = vsel %vm128_vm0, %v120_v15, 0.0  ;;  %v131_v20 = vsel %vm128_vm0, %v121_v16, 0.0  ;;  %v132_v22 = vsel %vm128_vm0, %v122_v17, 0.0 }
  0x21   :  { %v156_v21 = vadd.f32 %v130_v19, %v129_v18  ;;  %p240_p0 = pnand %p239_p13, %p233_p10 }
  0x23   :  { %v157_v23 = vadd.f32 %v156_v21, %v131_v20 }
  0x25   :  { %v158_v24 = vadd.f32 %v157_v23, %v132_v22 }
  0x27   :  { %159 = vadd.xlane.f32.xlu0 %v158_v24 }
  0xb0   :  { %v160_v25 = vpop.xlane.xlu0 %159 }
  0xb1   :  { %v161_v26 = vrot.slane %v160_v25, 4 }
  0xb3   :  { %v162_v27 = vadd.f32 %v161_v26, %v160_v25 }
  0xb5   :  { %v163_v28 = vrot.slane %v162_v27, 2 }
  0xb7   :  { %v164_v29 = vadd.f32 %v163_v28, %v162_v27 }
  0xb9   :  { %v165_v30 = vrot.slane %v164_v29, 1 }
  0xbb   :  { %v166_v31 = vadd.f32 %v165_v30, %v164_v29 }
  0xbd   :  { %187 = vpush %v166_v31 }
  0xee   :  { %s188_s19 = spop %187 }
  0xef   :  { %v168_v32 = vstv %s188_s19 }
  0xf0   :  { %170 = vst.msk [vmem:[#allocation8] sm:$0x1] %vm169_vm1, %v168_v32 }
  0xf1   :  { %243 = shalt.err (!%p240_p0)
}
  0xf2   :  { %180 = dma.vmem_to_hbm [thread:$0]  %s178_s1, 16, %s287_s2, [#allocation5]  }
  0xf3   :  { %256 = dma.done.wait [#allocation5], 16  }
  0xf4   :  { %257 = vsyncadd [#allocation5], 4294967280 }
  0xf5   :  { %184 = vsyncpa [#allocation4], 1 }
  0xf6   :  { %185 = vsyncpa [#allocation7], 1 }
  0xf7   :  { %186 = vsyncpa [#allocation5], 1 }

</bundles_post_ra>
